<compile_context>
chip_gen: v7x
topology: tpu7x:2x2x1
jax: 0.10.0
libtpu: 0.0.40
codegen_flags: <defaults>
</compile_context>

<pallas_src>
import math

import jax
import jax.numpy as jnp
import numpy as np
from jax.experimental import pallas as pl
from jax.experimental.pallas import tpu as pltpu

JOINT_N = 23
JOINT_PAD = 32  # zero-padded joint count (sublane-friendly MXU K-dim)
# kintree_table[0] from the PyTorch module (parents of each joint).
PARENTS = np.array(
    [-1, 0, 1, 1, 3, 4, 5, 4, 7, 4, 9, 1, 11, 12, 13, 12, 15, 12, 17, 0, 19, 0, 21],
    dtype=np.int32,
)


# ---------------------------------------------------------------------------
# Plain-JAX glue: Rodrigues + kinematic chain (23 joints, tiny, sequential).
# ---------------------------------------------------------------------------
def rodrigues(pose):
    """(J, 3) axis-angle -> (J, 3, 3) rotation matrices."""
    eps = 1e-8
    angle = jnp.sqrt(jnp.sum(pose * pose, axis=-1, keepdims=True) + eps)  # (J,1)
    axis = pose / angle
    c = jnp.cos(angle)[..., None]                                          # (J,1,1)
    s = jnp.sin(angle)[..., None]
    x, y, z = axis[:, 0], axis[:, 1], axis[:, 2]
    zeros = jnp.zeros_like(x)
    K = jnp.stack([zeros, -z, y, z, zeros, -x, -y, x, zeros], axis=-1).reshape(-1, 3, 3)
    eye = jnp.eye(3, dtype=pose.dtype)[None]
    outer = axis[:, :, None] * axis[:, None, :]
    return c * eye + (1.0 - c) * outer + s * K


def rigid_transforms(rot_mats, joints, parents):
    """SMPL-style kinematic chain.

    Returns A (J, 4, 4) = world transforms with rest pose removed, and the
    posed joint locations (J, 3).
    """
    J = joints.shape[0]
    dtype = joints.dtype

    def make44(R, t):
        top = jnp.concatenate([R, t[:, None]], axis=1)                 # (3,4)
        bot = jnp.array([[0.0, 0.0, 0.0, 1.0]], dtype=dtype)
        return jnp.concatenate([top, bot], axis=0)                     # (4,4)

    G = [None] * J
    G[0] = make44(rot_mats[0], joints[0])
    for i in range(1, J):
        p = int(parents[i])
        local = make44(rot_mats[i], joints[i] - joints[p])
        G[i] = G[p] @ local
    G = jnp.stack(G, axis=0)                                            # (J,4,4)
    posed_joints = G[:, :3, 3]
    corr = jnp.einsum("jab,jb->ja", G[:, :3, :3], joints)               # (J,3)
    A = G.at[:, :3, 3].add(-corr)
    return A, posed_joints


# ---------------------------------------------------------------------------
# Pallas kernel: skinning matmul + transform apply + offset + Laplacian loss.
# Grid axis streams the (pre-transposed, pre-padded) Laplacian L^T in
# (V, tile_r) column blocks.
# ---------------------------------------------------------------------------
def lbs_kernel(skin_t_ref, a_t_ref, vh_ref, off_ref, lap_t_ref,
               out_v_ref, out_loss_ref, acc_ref):
    i = pl.program_id(0)

    @pl.when(i == 0)
    def _():
        # Blended transform per vertex, V in lanes:
        #   (16, JP) @ (JP, V) -> (16, V), row k = element k of the row-major 4x4.
        T = jnp.dot(a_t_ref[...], skin_t_ref[...],
                    preferred_element_type=jnp.float32)                 # (16, V)
        x = vh_ref[0:1, :]
        y = vh_ref[1:2, :]
        z = vh_ref[2:3, :]
        px = T[0:1] * x + T[1:2] * y + T[2:3] * z + T[3:4]
        py = T[4:5] * x + T[5:6] * y + T[6:7] * z + T[7:8]
        pz = T[8:9] * x + T[9:10] * y + T[10:11] * z + T[11:12]
        # (3, V) lane-dense posed vertices + (3, 1) offset broadcast over lanes.
        out_v_ref[...] = jnp.concatenate([px, py, pz], axis=0) + off_ref[...]
        acc_ref[...] = jnp.zeros_like(acc_ref)

    # Graph-Laplacian smoothness loss, flipped orientation (N = tile_r lanes):
    #   (3, V) @ (V, tile_r) == (L[rows,:] @ posed)^T for this row tile of L.
    posed = out_v_ref[...]                                              # resident (3, V)
    lx = jnp.dot(posed, lap_t_ref[...], preferred_element_type=jnp.float32)
    # Per-step accumulation stays on the VPU; single cross-lane reduce at end.
    acc_ref[...] = acc_ref[...] + lx * lx

    @pl.when(i == pl.num_programs(0) - 1)
    def _():
        out_loss_ref[0, 0] = jnp.sum(acc_ref[...])


def _pick_lap_tile(V, V_pad, vmem_budget_bytes=16 << 20, max_tile=None):
    """Largest lane-aligned column tile of L^T dividing V_pad within budget."""
    cands = [V_pad, 2048, 1024, 512, 256, 128]
    if max_tile is not None:
        cands = [t for t in cands if t <= max_tile]
    for t in cands:
        if t >= 128 and V_pad % t == 0 and V * t * 4 * 2 <= vmem_budget_bytes:
            return t
    return 128


def prepare_lbs_buffers(vertices, skinning, laplacian, max_tile=None):
    """Init-time ("register_buffer") layout plumbing for the kernel.

    vertices (V,3), skinning (V,J), laplacian (V,V) -> kernel-layout buffers.
    """
    V, J = skinning.shape
    V_pad = ((V + 127) // 128) * 128
    # V into lanes, pad J -> JOINT_PAD with zeros.
    skin_t = jnp.zeros((JOINT_PAD, V), jnp.float32).at[:J, :].set(
        skinning.astype(jnp.float32).T)                                  # (JP, V)
    verts_h = jnp.concatenate(
        [vertices.astype(jnp.float32).T, jnp.ones((1, V), jnp.float32)], axis=0)  # (4, V)
    # Degree-normalized Laplacian is NOT symmetric -> explicit (one-time)
    # transpose; zero-pad columns to a lane-aligned width (padded columns
    # contribute exactly 0 to the loss).
    lap_t = jnp.zeros((V, V_pad), jnp.float32).at[:, :V].set(
        laplacian.astype(jnp.float32).T)                                 # (V, V_pad)
    tile_r = _pick_lap_tile(V, V_pad, max_tile=max_tile)
    return dict(skin_t=skin_t, verts_h=verts_h, lap_t=lap_t,
                tile_r=tile_r, n_verts=V, n_cols=V_pad)


def lbs_pallas(kbuf, a_flat, offset):
    """kbuf: prepare_lbs_buffers output; a_flat (J,16) f32; offset (3,)."""
    V = kbuf["n_verts"]
    V_pad = kbuf["n_cols"]
    tile_r = kbuf["tile_r"]
    JP = JOINT_PAD
    J = a_flat.shape[0]

    # Tiny per-call layout work: (16, JP) transform slab + (3,1) offset.
    a_t = jnp.zeros((16, JP), jnp.float32).at[:, :J].set(a_flat.astype(jnp.float32).T)
    off = offset.reshape(3, 1).astype(jnp.float32)

    grid = (V_pad // tile_r,)

    posed_t, loss = pl.pallas_call(
        lbs_kernel,
        grid=grid,
        in_specs=[
            pl.BlockSpec((JP, V), lambda i: (0, 0)),
            pl.BlockSpec((16, JP), lambda i: (0, 0)),
            pl.BlockSpec((4, V), lambda i: (0, 0)),
            pl.BlockSpec((3, 1), lambda i: (0, 0)),
            pl.BlockSpec((V, tile_r), lambda i: (0, i)),    # stream L^T column tiles
        ],
        out_specs=(
            pl.BlockSpec((3, V), lambda i: (0, 0)),          # resident across grid
            pl.BlockSpec(memory_space=pltpu.MemorySpace.SMEM),
        ),
        out_shape=(
            jax.ShapeDtypeStruct((3, V), jnp.float32),
            jax.ShapeDtypeStruct((1, 1), jnp.float32),
        ),
        scratch_shapes=[pltpu.VMEM((3, tile_r), jnp.float32)],
        compiler_params=pltpu.CompilerParams(dimension_semantics=("arbitrary",)),
    )(kbuf["skin_t"], a_t, kbuf["verts_h"], off, kbuf["lap_t"])

    return posed_t.T, loss[0, 0]                                         # (V,3), scalar


# ---------------------------------------------------------------------------
# Forward pass (mirrors Model.forward).
# ---------------------------------------------------------------------------
def forward(batch_size, params, buffers):
    # pose tensor assembly (exact same slots as the PyTorch forward).
    pose = jnp.zeros((JOINT_N, 3), jnp.float32)
    pose = pose.at[0].set(params["joint_0"][0])
    pose = pose.at[3].set(math.pi / 2 * jnp.tanh(params["joint_2"][0]))
    pose = pose.at[11].set(math.pi / 2 * jnp.tanh(params["joint_4"][0]))
    pose = pose.at[4].set(math.pi / 2 * jnp.tanh(params["joint_3"][0]))
    pose = pose.at[12].set(math.pi / 2 * jnp.tanh(params["joint_5"][0]))

    rot = rodrigues(pose)
    A, posed_joints = rigid_transforms(rot, buffers["joints"], PARENTS)
    a_flat = A.reshape(JOINT_N, 16)

    offset = buffers["random_dis"] + params["displacement"][0, 0]        # (3,)

    posed_verts, lap_loss = lbs_pallas(buffers["kernel"], a_flat, offset)
    V = posed_verts.shape[0]

    joints_out = posed_joints + offset[None, :]                          # (J,3)

    verts_batched = jnp.broadcast_to(posed_verts[None], (batch_size, V, 3))
    faces = buffers["faces"]
    faces_batched = jnp.broadcast_to(faces[None], (batch_size,) + faces.shape)

    l2_norm = 0
    # sr.LaplacianLoss: per-sample sum((L @ v)^2), then mean over batch (==1 here).
    laplacian_loss = lap_loss
    # TODO(synk): sr.Mesh object construction has no JAX equivalent; return raw arrays.
    return (verts_batched, faces_batched, joints_out), l2_norm, laplacian_loss


# ---------------------------------------------------------------------------
# Deterministic synthetic data (stands in for the .obj / .pkl / location file).
# ---------------------------------------------------------------------------
def build_laplacian(faces, nv):
    lap = np.zeros((nv, nv), dtype=np.float32)
    for f in faces:
        i0, i1, i2 = int(f[0]), int(f[1]), int(f[2])
        lap[i0, i1] = -1.0
        lap[i1, i0] = -1.0
        lap[i1, i2] = -1.0
        lap[i2, i1] = -1.0
        lap[i2, i0] = -1.0
        lap[i0, i2] = -1.0
    r = np.arange(nv)
    lap[r, r] = -lap.sum(1)
    lap = lap / lap[r, r][:, None]
    return lap


if __name__ == "__main__":
    key = jax.random.PRNGKey(0)
    V = 384  # multiple grid steps with max_tile=128 -> exercises streaming path
    k_v, k_j, k_s, k_p = jax.random.split(key, 4)

    vertices = 0.1 * jax.random.normal(k_v, (V, 3), jnp.float32)
    joints = 0.1 * jax.random.normal(k_j, (JOINT_N, 3), jnp.float32)
    skinning = jax.nn.softmax(jax.random.normal(k_s, (V, JOINT_N), jnp.float32), axis=-1)

    # Ring mesh so every vertex has neighbors (valid Laplacian).
    faces_np = np.stack(
        [np.arange(V), (np.arange(V) + 1) % V, (np.arange(V) + 2) % V], axis=1
    ).astype(np.int32)
    laplacian = jnp.asarray(build_laplacian(faces_np, V))

    buffers = {
        "vertices": vertices,
        "joints": joints,
        "skinning": skinning,
        "faces": jnp.asarray(faces_np),
        "laplacian": laplacian,
        # stands in for the parsed "estimated location" file contents
        "random_dis": jnp.array([0.1, -0.2, 0.3], jnp.float32),
        # init-time kernel-layout buffers (incl. pre-transposed padded L^T)
        "kernel": prepare_lbs_buffers(vertices, skinning, laplacian, max_tile=128),
    }

    # Parameters: module inits them to zeros; use small deterministic values so
    # the Rodrigues / tanh / kinematic path is exercised non-trivially.
    pk = iter(jax.random.split(k_p, 8))
    params = {
        "displacement": 0.01 * jax.random.normal(next(pk), (1, 1, 3), jnp.float32),
        "joint_0": 0.05 * jax.random.normal(next(pk), (1, 3), jnp.float32),
        "joint_2": 0.05 * jax.random.normal(next(pk), (1, 3), jnp.float32),
        "joint_3": 0.05 * jax.random.normal(next(pk), (1, 3), jnp.float32),
        "joint_4": 0.05 * jax.random.normal(next(pk), (1, 3), jnp.float32),
        "joint_5": 0.05 * jax.random.normal(next(pk), (1, 3), jnp.float32),
    }

    batch_size = 2
    (verts_b, faces_b, joints_out), l2_norm, lap_loss = forward(batch_size, params, buffers)
    jax.block_until_ready((verts_b, faces_b, joints_out, lap_loss))

    # Cross-check the Pallas path against a plain-JAX reference.
    pose_ref = jnp.zeros((JOINT_N, 3), jnp.float32)
    pose_ref = pose_ref.at[0].set(params["joint_0"][0])
    pose_ref = pose_ref.at[3].set(math.pi / 2 * jnp.tanh(params["joint_2"][0]))
    pose_ref = pose_ref.at[11].set(math.pi / 2 * jnp.tanh(params["joint_4"][0]))
    pose_ref = pose_ref.at[4].set(math.pi / 2 * jnp.tanh(params["joint_3"][0]))
    pose_ref = pose_ref.at[12].set(math.pi / 2 * jnp.tanh(params["joint_5"][0]))
    A_ref, _ = rigid_transforms(rodrigues(pose_ref), buffers["joints"], PARENTS)
    T_ref = jnp.einsum("vj,jab->vab", buffers["skinning"], A_ref,
                       precision=jax.lax.Precision.HIGHEST)
    vh_ref = jnp.concatenate([vertices, jnp.ones((V, 1), jnp.float32)], axis=1)
    posed_ref = jnp.einsum("vab,vb->va", T_ref, vh_ref)[:, :3]
    posed_ref = posed_ref + (buffers["random_dis"] + params["displacement"][0, 0])[None]
    lx_ref = jnp.matmul(laplacian, posed_ref, precision=jax.lax.Precision.HIGHEST)
    lap_ref = jnp.sum(jnp.square(lx_ref))
    assert jnp.allclose(verts_b[0], posed_ref, atol=1e-4), "vertex mismatch"
    assert jnp.allclose(lap_loss, lap_ref, rtol=2e-4, atol=1e-4), "loss mismatch"

    assert verts_b.shape == (batch_size, V, 3)
    assert faces_b.shape == (batch_size, V, 3)
    assert joints_out.shape == (JOINT_N, 3)
    assert jnp.isfinite(lap_loss)
    print("KERNEL_OK")
</pallas_src>

<mosaic_0001>
module attributes {stable_mosaic.version = 11 : i64} {
  func.func @lbs_kernel(%arg0: i32, %arg1: memref<32x384xf32, #tpu.memory_space<vmem>>, %arg2: memref<16x32xf32, #tpu.memory_space<vmem>>, %arg3: memref<4x384xf32, #tpu.memory_space<vmem>>, %arg4: memref<3x1xf32, #tpu.memory_space<vmem>>, %arg5: memref<384x128xf32, #tpu.memory_space<vmem>>, %arg6: memref<3x384xf32, #tpu.memory_space<vmem>>, %arg7: memref<1x1xf32, #tpu.memory_space<smem>>, %arg8: memref<3x128xf32, #tpu.memory_space<vmem>>) attributes {dimension_semantics = [#tpu.dimension_semantics<arbitrary>], iteration_bounds = array<i64: 3>, scalar_prefetch = 0 : i64, scratch_operands = 1 : i64, tpu.core_type = #tpu.core_type<tc>, window_params = [{pipeline_mode = #tpu.pipeline_mode<synchronous>, transform_indices = @transform_0, window_bounds = array<i64: 32, 384>}, {pipeline_mode = #tpu.pipeline_mode<synchronous>, transform_indices = @transform_1, window_bounds = array<i64: 16, 32>}, {pipeline_mode = #tpu.pipeline_mode<synchronous>, transform_indices = @transform_2, window_bounds = array<i64: 4, 384>}, {pipeline_mode = #tpu.pipeline_mode<synchronous>, transform_indices = @transform_3, window_bounds = array<i64: 3, 1>}, {transform_indices = @transform_4, window_bounds = array<i64: 384, 128>}, {pipeline_mode = #tpu.pipeline_mode<synchronous>, transform_indices = @transform_5, window_bounds = array<i64: 3, 384>}, {transform_indices = @transform_6, window_bounds = array<i64: 1, 1>}]} {
    %c0_i32 = arith.constant 0 : i32
    %0 = arith.cmpi eq, %arg0, %c0_i32 : i32
    %1 = arith.extui %0 : i1 to i32
    %c0_i32_0 = arith.constant 0 : i32
    %2 = arith.cmpi ne, %1, %c0_i32_0 : i32
    scf.if %2 {
      %c0_9 = arith.constant 0 : index
      %c0_10 = arith.constant 0 : index
      %13 = vector.load %arg2[%c0_9, %c0_10] : memref<16x32xf32, #tpu.memory_space<vmem>>, vector<16x32xf32>
      %c0_11 = arith.constant 0 : index
      %c0_12 = arith.constant 0 : index
      %14 = vector.load %arg1[%c0_11, %c0_12] : memref<32x384xf32, #tpu.memory_space<vmem>>, vector<32x384xf32>
      %cst_13 = arith.constant dense<0.000000e+00> : vector<16x384xf32>
      %15 = tpu.matmul %13, %14, %cst_13 {dimension_numbers = #tpu.dot_dimension_numbers<[1], [0], [0], [1], [0, 0, 1, 1], [], []>} : vector<16x32xf32>, vector<32x384xf32>, vector<16x384xf32> -> vector<16x384xf32>
      %c0_14 = arith.constant 0 : index
      %c0_15 = arith.constant 0 : index
      %16 = vector.load %arg3[%c0_14, %c0_15] : memref<4x384xf32, #tpu.memory_space<vmem>>, vector<1x384xf32>
      %c1 = arith.constant 1 : index
      %c0_16 = arith.constant 0 : index
      %17 = vector.load %arg3[%c1, %c0_16] : memref<4x384xf32, #tpu.memory_space<vmem>>, vector<1x384xf32>
      %c2 = arith.constant 2 : index
      %c0_17 = arith.constant 0 : index
      %18 = vector.load %arg3[%c2, %c0_17] : memref<4x384xf32, #tpu.memory_space<vmem>>, vector<1x384xf32>
      %19 = vector.extract_strided_slice %15 {offsets = [0, 0], sizes = [1, 384], strides = [1, 1]} : vector<16x384xf32> to vector<1x384xf32>
      %20 = arith.mulf %19, %16 : vector<1x384xf32>
      %21 = vector.extract_strided_slice %15 {offsets = [1, 0], sizes = [1, 384], strides = [1, 1]} : vector<16x384xf32> to vector<1x384xf32>
      %22 = arith.mulf %21, %17 : vector<1x384xf32>
      %23 = arith.addf %20, %22 : vector<1x384xf32>
      %24 = vector.extract_strided_slice %15 {offsets = [2, 0], sizes = [1, 384], strides = [1, 1]} : vector<16x384xf32> to vector<1x384xf32>
      %25 = arith.mulf %24, %18 : vector<1x384xf32>
      %26 = arith.addf %23, %25 : vector<1x384xf32>
      %27 = vector.extract_strided_slice %15 {offsets = [3, 0], sizes = [1, 384], strides = [1, 1]} : vector<16x384xf32> to vector<1x384xf32>
      %28 = arith.addf %26, %27 : vector<1x384xf32>
      %29 = vector.extract_strided_slice %15 {offsets = [4, 0], sizes = [1, 384], strides = [1, 1]} : vector<16x384xf32> to vector<1x384xf32>
      %30 = arith.mulf %29, %16 : vector<1x384xf32>
      %31 = vector.extract_strided_slice %15 {offsets = [5, 0], sizes = [1, 384], strides = [1, 1]} : vector<16x384xf32> to vector<1x384xf32>
      %32 = arith.mulf %31, %17 : vector<1x384xf32>
      %33 = arith.addf %30, %32 : vector<1x384xf32>
      %34 = vector.extract_strided_slice %15 {offsets = [6, 0], sizes = [1, 384], strides = [1, 1]} : vector<16x384xf32> to vector<1x384xf32>
      %35 = arith.mulf %34, %18 : vector<1x384xf32>
      %36 = arith.addf %33, %35 : vector<1x384xf32>
      %37 = vector.extract_strided_slice %15 {offsets = [7, 0], sizes = [1, 384], strides = [1, 1]} : vector<16x384xf32> to vector<1x384xf32>
      %38 = arith.addf %36, %37 : vector<1x384xf32>
      %39 = vector.extract_strided_slice %15 {offsets = [8, 0], sizes = [1, 384], strides = [1, 1]} : vector<16x384xf32> to vector<1x384xf32>
      %40 = arith.mulf %39, %16 : vector<1x384xf32>
      %41 = vector.extract_strided_slice %15 {offsets = [9, 0], sizes = [1, 384], strides = [1, 1]} : vector<16x384xf32> to vector<1x384xf32>
      %42 = arith.mulf %41, %17 : vector<1x384xf32>
      %43 = arith.addf %40, %42 : vector<1x384xf32>
      %44 = vector.extract_strided_slice %15 {offsets = [10, 0], sizes = [1, 384], strides = [1, 1]} : vector<16x384xf32> to vector<1x384xf32>
      %45 = arith.mulf %44, %18 : vector<1x384xf32>
      %46 = arith.addf %43, %45 : vector<1x384xf32>
      %47 = vector.extract_strided_slice %15 {offsets = [11, 0], sizes = [1, 384], strides = [1, 1]} : vector<16x384xf32> to vector<1x384xf32>
      %48 = arith.addf %46, %47 : vector<1x384xf32>
      %49 = tpu.concatenate %28, %38, %48 in 0 : vector<1x384xf32>, vector<1x384xf32>, vector<1x384xf32> -> vector<3x384xf32>
      %c0_18 = arith.constant 0 : index
      %c0_19 = arith.constant 0 : index
      %50 = vector.load %arg4[%c0_18, %c0_19] : memref<3x1xf32, #tpu.memory_space<vmem>>, vector<3x1xf32>
      %51 = vector.broadcast %50 : vector<3x1xf32> to vector<3x384xf32>
      %52 = arith.addf %49, %51 : vector<3x384xf32>
      %c0_20 = arith.constant 0 : index
      %c0_21 = arith.constant 0 : index
      %53 = vector.load %arg6[%c0_20, %c0_21] : memref<3x384xf32, #tpu.memory_space<vmem>>, vector<3x384xf32>
      tpu.vector_store %arg6[%c0_20, %c0_21], %52 {strides = array<i32>} : memref<3x384xf32, #tpu.memory_space<vmem>>, vector<3x384xf32>,
      %cst_22 = arith.constant 0.000000e+00 : f32
      %54 = vector.broadcast %cst_22 : f32 to vector<3x128xf32>
      %c0_23 = arith.constant 0 : index
      %c0_24 = arith.constant 0 : index
      %55 = vector.load %arg8[%c0_23, %c0_24] : memref<3x128xf32, #tpu.memory_space<vmem>>, vector<3x128xf32>
      tpu.vector_store %arg8[%c0_23, %c0_24], %54 {strides = array<i32>} : memref<3x128xf32, #tpu.memory_space<vmem>>, vector<3x128xf32>,
    } else {
    }
    %c0 = arith.constant 0 : index
    %c0_1 = arith.constant 0 : index
    %3 = vector.load %arg6[%c0, %c0_1] : memref<3x384xf32, #tpu.memory_space<vmem>>, vector<3x384xf32>
    %c0_2 = arith.constant 0 : index
    %c0_3 = arith.constant 0 : index
    %4 = vector.load %arg5[%c0_2, %c0_3] : memref<384x128xf32, #tpu.memory_space<vmem>>, vector<384x128xf32>
    %cst = arith.constant dense<0.000000e+00> : vector<3x128xf32>
    %5 = tpu.matmul %3, %4, %cst {dimension_numbers = #tpu.dot_dimension_numbers<[1], [0], [0], [1], [0, 0, 1, 1], [], []>} : vector<3x384xf32>, vector<384x128xf32>, vector<3x128xf32> -> vector<3x128xf32>
    %c0_4 = arith.constant 0 : index
    %c0_5 = arith.constant 0 : index
    %6 = vector.load %arg8[%c0_4, %c0_5] : memref<3x128xf32, #tpu.memory_space<vmem>>, vector<3x128xf32>
    %7 = arith.mulf %5, %5 : vector<3x128xf32>
    %8 = arith.addf %6, %7 : vector<3x128xf32>
    %c0_6 = arith.constant 0 : index
    %c0_7 = arith.constant 0 : index
    %9 = vector.load %arg8[%c0_6, %c0_7] : memref<3x128xf32, #tpu.memory_space<vmem>>, vector<3x128xf32>
    tpu.vector_store %arg8[%c0_6, %c0_7], %8 {strides = array<i32>} : memref<3x128xf32, #tpu.memory_space<vmem>>, vector<3x128xf32>,
    %c2_i32 = arith.constant 2 : i32
    %10 = arith.cmpi eq, %arg0, %c2_i32 : i32
    %11 = arith.extui %10 : i1 to i32
    %c0_i32_8 = arith.constant 0 : i32
    %12 = arith.cmpi ne, %11, %c0_i32_8 : i32
    scf.if %12 {
      %c0_9 = arith.constant 0 : index
      %c0_10 = arith.constant 0 : index
      %13 = vector.load %arg8[%c0_9, %c0_10] : memref<3x128xf32, #tpu.memory_space<vmem>>, vector<3x128xf32>
      %14 = vector.shape_cast %13 : vector<3x128xf32> to vector<1x3x128xf32>
      %cst_11 = arith.constant dense<0.000000e+00> : vector<1xf32>
      %15 = vector.multi_reduction <add>, %14, %cst_11 [1, 2] : vector<1x3x128xf32> to vector<1xf32>
      %16 = vector.shape_cast %15 : vector<1xf32> to vector<1x1x1xf32>
      %17 = vector.extract %16[0, 0, 0] : f32 from vector<1x1x1xf32>
      %c0_12 = arith.constant 0 : index
      %c0_13 = arith.constant 0 : index
      %18 = memref.load %arg7[%c0_12, %c0_13] : memref<1x1xf32, #tpu.memory_space<smem>>
      memref.store %17, %arg7[%c0_12, %c0_13] : memref<1x1xf32, #tpu.memory_space<smem>>
    } else {
    }
    return
  }
  func.func @transform_0(%arg0: i32) -> (i32, i32) {
    %c0_i32 = arith.constant 0 : i32
    %c0_i32_0 = arith.constant 0 : i32
    %c0_i32_1 = arith.constant 0 : i32
    return %c0_i32, %c0_i32_0 : i32, i32
  }
  func.func @transform_1(%arg0: i32) -> (i32, i32) {
    %c0_i32 = arith.constant 0 : i32
    %c0_i32_0 = arith.constant 0 : i32
    %c0_i32_1 = arith.constant 0 : i32
    return %c0_i32, %c0_i32_0 : i32, i32
  }
  func.func @transform_2(%arg0: i32) -> (i32, i32) {
    %c0_i32 = arith.constant 0 : i32
    %c0_i32_0 = arith.constant 0 : i32
    %c0_i32_1 = arith.constant 0 : i32
    return %c0_i32, %c0_i32_0 : i32, i32
  }
  func.func @transform_3(%arg0: i32) -> (i32, i32) {
    %c0_i32 = arith.constant 0 : i32
    %c0_i32_0 = arith.constant 0 : i32
    %c0_i32_1 = arith.constant 0 : i32
    return %c0_i32, %c0_i32_0 : i32, i32
  }
  func.func @transform_4(%arg0: i32) -> (i32, i32) {
    %c0_i32 = arith.constant 0 : i32
    %c0_i32_0 = arith.constant 0 : i32
    return %c0_i32, %arg0 : i32, i32
  }
  func.func @transform_5(%arg0: i32) -> (i32, i32) {
    %c0_i32 = arith.constant 0 : i32
    %c0_i32_0 = arith.constant 0 : i32
    %c0_i32_1 = arith.constant 0 : i32
    return %c0_i32, %c0_i32_0 : i32, i32
  }
  func.func @transform_6(%arg0: i32) -> (i32, i32) {
    %c0_i32 = arith.constant 0 : i32
    %c0_i32_0 = arith.constant 0 : i32
    %c0_i32_1 = arith.constant 0 : i32
    return %c0_i32, %c0_i32_0 : i32, i32
  }
}

</mosaic_0001>

<bundles_post_ra>
// kernel: tpu_custom_call.1
= control target key start
LH: loop header
LB: loop body
LE: loop exit
PB: predicated region body
PF: predicated region fallthrough
CT: control target
= control target key end

     0   :  { %12 = vsyncpa [#allocation4], 0  ;;  %s1788_s0 = inlined_call_operand.hbm [shape: f32[32,384], index: 0, kind: input, shape index: {}]   ;;  %s1789_s1 = inlined_call_operand.hbm [shape: f32[16,32], index: 1, kind: input, shape index: {}]   ;;  %s1790_s2 = inlined_call_operand.vmem [shape: f32[4,384], index: 2, kind: input, shape index: {}]   ;;  %s1791_s3 = inlined_call_operand.vmem [shape: f32[3,1], index: 3, kind: input, shape index: {}]   ;;  %s1792_s4 = inlined_call_operand.hbm [shape: f32[384,384], index: 4, kind: input, shape index: {}]   ;;  %s1793_s5 = inlined_call_operand.hbm [shape: f32[3,384], index: 5, kind: output, shape index: {0}]   ;;  %s1794_s6 = inlined_call_operand.hbm [shape: f32[1,1], index: 6, kind: output, shape index: {1}]  }
   0x1   :  { %13 = vsyncpa [#allocation8], 0 }
   0x2   :  { %14 = vsyncpa [#allocation5], 0 }
   0x3   :  { %15 = vsyncpa [#allocation6], 0  ;;  %s1472_s21 = smov 0   ;;  %s1474_s22 = smov 0  }
   0x4   :  { %s1476_s23 = smov 0   ;;  %s1478_s24 = smov 0  }
   0x5 LB: > { %s1491_s25 = sadd.s32 4294967295, %s1421_s24   ;;  %s1494_s26 = sadd.s32 1, %s1421_s24   ;;  %s1421_s24 = sphi %s1478_s24, %s1817_s24   ;;  %s1417_s23 = sphi %s1476_s23, %s1816_s23   ;;  %s1413_s22 = sphi %s1474_s22, %s1815_s22   ;;  %s1409_s21 = sphi %s1472_s21, %s1814_s21  }
   0x6   : > { %s109_s27 = ssub.s32 %s1421_s24, %s1494_s26  ;;  %s112_s28 = sadd.s32 1, %s1417_s23 }
   0x7   : > { %p110_p0 = scmp.eq.s32.totalorder %s109_s27, 0  ;;  %p119_p1 = scmp.ne.s32.totalorder %s1417_s23, %s1413_s22 }
   0x8   : > { %p120_p2 = scmp.eq.s32.totalorder %s1421_s24, 0  ;;  %p125_p3 = scmp.ne.s32.totalorder %s1413_s22, %s1409_s21 }
   0x9   : > { %s1504_s29 = scalar_select %p110_p0, %s1417_s23, %s112_s28  }
   0xa   : > { %p1506_p4 = por %p120_p2, %p119_p1  ;;  %p1795_p5 = scmp.eq.s32.totalorder %s1491_s25, 0 }
   0xb   : > { %p960_p6 = scmp.ge.s32.totalorder %s1421_s24, 1  ;;  %p178_p7 = scmp.lt.s32.totalorder %s1421_s24, 4 }
   0xc   : > { %p1515_p8 = por %p1795_p5, %p125_p3  ;;  %s1423_s9 = smov [#allocation3]  }
   0xd   : > { %p1520_p10 = pnand %p960_p6, %p178_p7  ;;  %s190_s10 = sshll.u32 %s1423_s9, 4  ;;  %s191_s10 = int_to_ptr.vmem [resolvable:$true] %s190_s10 }
   0xe   : > { %s1801_s7 = scalar_select %p1515_p8, 1, 0 }
   0xf   : > { %s1802_s8 = scalar_select %p1520_p10, 1, 0 }
  0x10   : > { %p1180_p11 = pneg %p1520_p10  ;;  %p1193_p13 = scmp.lt.s32.totalorder %s1421_s24, 3 }
  0x11   : > { %s1247_s15 = scalar_lea.hbm %s1788_s0, 1536 }
  0x12   : > { %p1528_p12 = pnand %p1180_p11, %p1795_p5  ;;  %p1535_p0 = pnand %p1193_p13, %p1506_p4 }
  0x13   : > { %p1248_p1 = scmp.ne.s32.totalorder %s1788_s0, %s1247_s15  ;;  %p1254_p4 = scmp.lt.u32.totalorder %s1247_s15, %s1788_s0 }
  0x14   : > { %s1804_s12 = scalar_select %p1535_p0, 1, 0 }
  0x15   : > { %p1249_p2 = pneg %p1528_p12 }
  0x17   : > { %p1250_p3 = pnand %p1249_p2, %p1248_p1 }
  0x19   : > { %p1251_p6 = pneg %p1250_p3 }
  0x1b   : > { %p1256_p7 = pnand %p1254_p4, %p1251_p6 }
  0x1d   : > { %1259 = shalt.err (!%p1256_p7)
}
  0x1e   : > { %s1260_s20 = scalar_lea.vmem %s191_s10, 1536  ;;  %p1268_p5 = scmp.lt.s32.totalorder %s191_s10, %s191_s10 }
  0x1f   : > { %p1261_p11 = scmp.ne.s32.totalorder %s191_s10, %s1260_s20  ;;  %p1269_p8 = scmp.lt.s32.totalorder %s1260_s20, %s1260_s20 }
  0x21   : > { %p1263_p13 = pnand %p1261_p11, %p1249_p2  ;;  %p1270_p10 = por %p1269_p8, %p1268_p5 }
  0x23   : > { %p1264_p9 = pneg %p1263_p13 }
  0x25   : > { %p1271_p0 = pnand %p1270_p10, %p1264_p9 }
  0x27   : > { %1274 = shalt.err (!%p1271_p0)
}
  0x28   : > { %s1799_s21 = smov 384   ;;  %s1425_s27 = smov 24  }
  0x29   : > { %1183 = dma.hbm_to_vmem [thread:$0]  (!%p1528_p12), %s1788_s0, 1536, %s191_s10, [#allocation4], %s1799_s21, %s1799_s21, %s1425_s27  }
  0x2a   : > { %s1426_s9 = smov [#allocation7]   ;;  %s1275_s16 = scalar_lea.hbm %s1789_s1, 256 }
  0x2b   : > { %s203_s13 = sshll.u32 %s1426_s9, 4  ;;  %p1276_p5 = scmp.ne.s32.totalorder %s1789_s1, %s1275_s16  ;;  %s204_s13 = int_to_ptr.vmem [resolvable:$true] %s203_s13 }
  0x2c   : > { %p1282_p10 = scmp.lt.u32.totalorder %s1275_s16, %s1789_s1 }
  0x2d   : > { %p1278_p8 = pnand %p1276_p5, %p1249_p2 }
  0x2f   : > { %p1279_p9 = pneg %p1278_p8 }
  0x31   : > { %p1284_p0 = pnand %p1282_p10, %p1279_p9 }
  0x33   : > { %1287 = shalt.err (!%p1284_p0)
}
  0x34   : > { %s1288_s10 = scalar_lea.vmem %s204_s13, 256  ;;  %p1296_p4 = scmp.lt.s32.totalorder %s204_s13, %s204_s13 }
  0x35   : > { %p1289_p1 = scmp.ne.s32.totalorder %s204_s13, %s1288_s10  ;;  %p1297_p7 = scmp.lt.s32.totalorder %s1288_s10, %s1288_s10 }
  0x37   : > { %p1291_p3 = pnand %p1289_p1, %p1249_p2  ;;  %p1298_p11 = por %p1297_p7, %p1296_p4 }
  0x39   : > { %p1292_p6 = pneg %p1291_p3 }
  0x3b   : > { %p1299_p13 = pnand %p1298_p11, %p1292_p6 }
  0x3d   : > { %1302 = shalt.err (!%p1299_p13)
}
  0x3e   : > { %s1427_s27 = smov 128   ;;  %s1428_s28 = smov 8  }
  0x3f   : > { %1186 = dma.hbm_to_vmem [thread:$0]  (!%p1528_p12), %s1789_s1, 256, %s204_s13, [#allocation8], %s1427_s27, %s1427_s27, %s1428_s28  }
  0x40   : > { %s223_s14 = sand.u32 1, %s1421_s24   ;;  %s225_s15 = sand.u32 1, %s1417_s23  }
  0x41   : > { %s1158_s16 = smul.u32 384, %s225_s15  ;;  %s964_s17 = sshll.u32 %s1421_s24, 7 }
  0x42   : > { %s1592_s20 = scalar_lea.hbm %s1792_s4, %s964_s17  ;;  %s1596_s21 = scalar_lea.sflag [#allocation4], %s223_s14 }
  0x43   : > { %s227_s11 = scalar_lea.vmem [#allocation9], %s1158_s16  ;;  %s1303_s13 = scalar_lea.hbm %s1592_s20, 6144 }
  0x44   : > { %s233_s10 = sshll.u32 %s227_s11, 4  ;;  %p1304_p12 = scmp.ne.s32.totalorder %s1592_s20, %s1303_s13  ;;  %s1594_s10 = int_to_ptr.vmem [resolvable:$true] %s233_s10 }
  0x45   : > { %p1805_p2 = scmp.ne.s32.totalorder %s1804_s12, 0  ;;  %s1308_s9 = scalar_lea.hbm %s1792_s4, 18432 }
  0x46   : > { %p1309_p10 = scmp.lt.u32.totalorder %s1592_s20, %s1792_s4  ;;  %p1310_p0 = scmp.lt.u32.totalorder %s1308_s9, %s1303_s13 }
  0x47   : > { %p1305_p5 = pneg %p1805_p2  ;;  %p1312_p3 = scmp.lt.u32.totalorder %s1303_s13, %s1592_s20 }
  0x48   : > { %p1311_p1 = por %p1310_p0, %p1309_p10 }
  0x49   : > { %p1306_p8 = pnand %p1305_p5, %p1304_p12 }
  0x4a   : > { %p1313_p6 = por %p1312_p3, %p1311_p1 }
  0x4b   : > { %p1307_p9 = pneg %p1306_p8 }
  0x4d   : > { %p1314_p4 = pnand %p1313_p6, %p1307_p9 }
  0x4f   : > { %1317 = shalt.err (!%p1314_p4)
}
  0x50   : > { %s1318_s14 = scalar_lea.vmem %s1594_s10, 6144  ;;  %s1429_s16 = smov [#allocation9]  }
  0x51   : > { %p1319_p7 = scmp.ne.s32.totalorder %s1594_s10, %s1318_s14  ;;  %s1323_s18 = sshll.u32 %s1429_s16, 4  ;;  %s1324_s18 = int_to_ptr.vmem [resolvable:$false] %s1323_s18 }
  0x52   : > { %s1325_s19 = scalar_lea.vmem %s1324_s18, 12288  ;;  %p1326_p12 = scmp.lt.s32.totalorder %s1594_s10, %s1324_s18 }
  0x53   : > { %p1321_p11 = pnand %p1319_p7, %p1305_p5  ;;  %p1327_p8 = scmp.lt.s32.totalorder %s1325_s19, %s1318_s14 }
  0x55   : > { %p1322_p13 = pneg %p1321_p11  ;;  %p1328_p10 = por %p1327_p8, %p1326_p12 }
  0x57   : > { %p1329_p0 = pnand %p1328_p10, %p1322_p13 }
  0x59   : > { %1332 = shalt.err (!%p1329_p0)
}
  0x5a   : > { %s1806_s11 = smov 384   ;;  %p1807_p5 = scmp.ne.s32.totalorder %s1802_s8, 0 }
  0x5b   : > { %1190 = dma.hbm_to_vmem [thread:$0]  (!%p1805_p2), %s1592_s20, 6144, %s1594_s10, %s1596_s21, %s1806_s11, %s1427_s27, %s1428_s28  }
  0x5c   : > { %245 = sbr.rel (%p1807_p5) target bundleno = 869 (0x365), region = 40  ;;  %p1808_p9 = scmp.eq.s32.totalorder (!%p1807_p5), %s1491_s25, 0 }
  0x63   : > { %1388 = dma.done.wait (%p1808_p9), [#allocation4], 1536   ;;  %p1809_p1 = pmov %p1808_p9 }
  0x65   : > { %1390 = vsyncadd (%p1809_p1), [#allocation4], 4294965760  ;;  %p1810_p3 = pmov %p1809_p1 }
  0x66   : > { %p1811_p6 = pmov %p1809_p1 }
  0x67   : > { %1392 = dma.done.wait (%p1810_p3), [#allocation8], 256  }
  0x68   : > { %1394 = vsyncadd (%p1811_p6), [#allocation8], 4294967040  ;;  %s255_s12 = sand.u32 1, %s1491_s25   ;;  %s257_s21 = sand.u32 1, %s1413_s22  }
  0x69   : > { %s1159_s27 = smul.u32 384, %s257_s21  ;;  %s256_s8 = scalar_lea.sflag [#allocation4], %s255_s12 }
  0x6a   : > { %p1812_p2 = scmp.ne.s32.totalorder %s1801_s7, 0 }
  0x6b   : > { %s1639_s28 = scalar_lea.vmem [#allocation9], %s1159_s27 }
  0x6c   : > { %1396 = dma.done.wait (%p1812_p2), %s256_s8, 6144  }
  0x6d   : > { %1398 = vsyncadd (%p1812_p2), %s256_s8, 4294961152  ;;  %p1813_p4 = scmp.ne.s32.totalorder %s1491_s25, 0 }
  0x6e   : > { %v290_v0 = vld [vmem:[#allocation3 + $0x8] sm:$0xff] (!%p1813_p4)  ;;  %v293_v1 = vld [vmem:[#allocation3 + $0x20] sm:$0xff] (!%p1813_p4)  ;;  %v291_v2 = vld [vmem:[#allocation3 + $0x10] sm:$0xff] (!%p1813_p4)  ;;  %v1430_v7 = vmov (!%p1813_p4), 0.0   ;;  %v1431_v8 = vmov (!%p1813_p4), 0   ;;  %vm301_vm0 = vcmask (!%p1813_p4), 261120   ;;  %v466_v23 = vlaneseq (!%p1813_p4) }
  0x6f   : > { %286 = sbr.rel (%p1813_p4) target bundleno = 359 (0x167), region = 56  ;;  %v1086_v3 = vpack.c.bf16 (!%p1813_p4), %v293_v1, %v290_v0  ;;  %v294_v4 = vld [vmem:[#allocation3 + $0x28] sm:$0xff] (!%p1813_p4)  ;;  %v289_v5 = vld [vmem:[#allocation3] sm:$0xff] (!%p1813_p4)  ;;  %v292_v6 = vld [vmem:[#allocation3 + $0x18] sm:$0xff] (!%p1813_p4)  ;;  %372 = vmatprep.mubr.f32.mxu0 (!%p1813_p4), %v1430_v7  ;;  %644 = vst [vmem:[#allocation2] sm:$0x7] (!%p1813_p4), %v1430_v7  ;;  %1245 = vset.pattern.permute.xlu0 (!%p1813_p4), %v1431_v8 }
  0x70   : > { %v1094_v9 = vpack.c.bf16 (!%p1813_p4), %v294_v4, %v291_v2  ;;  %v1088_v10 = vpack.c.bf16 (!%p1813_p4), %v292_v6, %v289_v5  ;;  %v296_v11 = vld [vmem:[#allocation3 + $0x38] sm:$0xff] (!%p1813_p4)  ;;  %v299_v12 = vld [vmem:[#allocation3 + $0x50] sm:$0xff] (!%p1813_p4)  ;;  %v297_v13 = vld [vmem:[#allocation3 + $0x40] sm:$0xff] (!%p1813_p4)  ;;  %v467_v24 = vshrl.u32 (!%p1813_p4), %v466_v23, 7  ;;  %vm621_vm1 = vcmask (!%p1813_p4), 1040384  }
  0x71   : > { %1087 = vmatprep.subr.bf16.mxu0 (!%p1813_p4), %v1086_v3  ;;  %v1090_v14 = vpack.c.bf16 (!%p1813_p4), %v299_v12, %v296_v11  ;;  %v300_v15 = vld [vmem:[#allocation3 + $0x58] sm:$0xff] (!%p1813_p4)  ;;  %v295_v16 = vld [vmem:[#allocation3 + $0x30] sm:$0xff] (!%p1813_p4)  ;;  %v298_v17 = vld [vmem:[#allocation3 + $0x48] sm:$0xff] (!%p1813_p4)  ;;  %vm625_vm2 = vcmask (!%p1813_p4), 1041408  }
  0x72   : > { %1095 = vmatprep.subr.bf16.mxu1 (!%p1813_p4), %v1094_v9  ;;  %1089 = vmatpush1.bf16.msra.mxu0 (!%p1813_p4), %v1088_v10  ;;  %v1098_v18 = vpack.c.bf16 (!%p1813_p4), %v300_v15, %v297_v13  ;;  %v1092_v19 = vpack.c.bf16 (!%p1813_p4), %v298_v17, %v295_v16  ;;  %v287_v20 = vld [vmem:[#allocation7] sm:$0xff] (!%p1813_p4)  ;;  %v629_v21 = vld [vmem:[%s1791_s3] sm:$0x7] (!%p1813_p4)  ;;  %v288_v22 = vld [vmem:[#allocation7 + $0x8] sm:$0xff] (!%p1813_p4)  ;;  %v468_v25 = vsub.s32 (!%p1813_p4), 0, %v467_v24  ;;  %v476_v26 = vsub.s32 (!%p1813_p4), 2, %v467_v24 }
  0x73   : > { %1097 = vmatpush3.bf16.msra.mxu1 (!%p1813_p4), %v1094_v9  ;;  %1091 = vmatprep.subr.bf16.mxu0 (!%p1813_p4), %v1090_v14  ;;  %v973_v27 = vld [vmem:[%s1790_s2 + $0x1] ss:$4 sm:$0x7] (!%p1813_p4)  ;;  %v974_v28 = vld [vmem:[%s1790_s2 + $0x2] ss:$4 sm:$0x7] (!%p1813_p4) }
  0x74   : > { %1099 = vmatprep.subr.bf16.mxu1 (!%p1813_p4), %v1098_v18  ;;  %1048 = vmatprep.mubr.msk.f32.mxu1 (!%p1813_p4), %vm301_vm0, %v287_v20  ;;  %v460_v29 = vld [vmem:[%s1790_s2] ss:$4 sm:$0x7] (!%p1813_p4)  ;;  %v488_v30 = vrot.slane (!%p1813_p4), %v973_v27, %v468_v25  ;;  %v519_v31 = vrot.slane (!%p1813_p4), %v974_v28, %v468_v25  ;;  %v472_v32 = vsub.s32 (!%p1813_p4), 1, %v467_v24  ;;  %v496_v35 = vrot.slane (!%p1813_p4), %v973_v27, %v476_v26 }
  0x75   : > { %632 = vperm.xlu0 (!%p1813_p4), %1245, %v629_v21   ;;  %v469_v33 = vrot.slane (!%p1813_p4), %v460_v29, %v468_v25  ;;  %v477_v34 = vrot.slane (!%p1813_p4), %v460_v29, %v476_v26  ;;  %v527_v37 = vrot.slane (!%p1813_p4), %v974_v28, %v476_v26 }
  0x76   : > { %1093 = vmatpush1.bf16.msra.mxu0 %v1092_v19  ;;  %v473_v42 = vrot.slane %v460_v29, %v472_v32  ;;  %v492_v43 = vrot.slane %v973_v27, %v472_v32  ;;  %v523_v48 = vrot.slane %v974_v28, %v472_v32 }
  0x77   : > { %1101 = vmatpush3.bf16.msra.mxu1 %v1098_v18 }
  0x79   : > { %969 = vmatmul.mubr.msk.f32.vlgmr.msra.gmra.mrb[0].mxu0 %vm301_vm0, %v287_v20 }
  0x7a   : > { %1049 = vmatmul.mubr.msk.f32.vlgmr.msra.gmra.mrb[0].mxu1 %vm301_vm0, %v288_v22  ;;  %378 = vmatprep.mubr.f32.mxu0 %v1430_v7 }
  0x7d   : > { %970 = vmatmul.mubr.msk.f32.gmra.mrb[2].mxu0 %vm301_vm0, %v288_v22 }
 0x14c   : > { %v374_v36 = vpop.f32.mrb[0].mxu0 }
 0x14d   : > { %v500_v38 = vmul.f32 %v488_v30, %v374_v36  ;;  %v531_v39 = vmul.f32 %v519_v31, %v374_v36  ;;  %v1050_v40 = vpop.f32.mrb[0].mxu1  ;;  %v1663_v41 = vpop.f32.mrb[1].mxu0  ;;  %v481_v44 = vmul.f32 %v469_v33, %v374_v36  ;;  %v549_v50 = vrot.slane %v374_v36, 3 }
 0x14e   : > { %v451_v45 = vpop.f32.mrb[1].mxu1  ;;  %v560_v46 = vmul.f32 %v1050_v40, %v477_v34  ;;  %v563_v47 = vmul.f32 %v1050_v40, %v496_v35  ;;  %v596_v53 = vrot.slane %v1050_v40, 3  ;;  %v578_v56 = vmul.f32 %v1050_v40, %v527_v37 }
 0x14f   : > { %v506_v49 = vrot.slane %v500_v38, 1  ;;  %v483_v51 = vmul.f32 %v477_v34, %v451_v45  ;;  %v502_v52 = vmul.f32 %v496_v35, %v451_v45  ;;  %v533_v54 = vmul.f32 %v527_v37, %v451_v45  ;;  %v633_v34 = vpop.permute.xlu0 %632 }
 0x150   : > { %v569_v55 = vrot.slane %v563_v47, 1  ;;  %v380_v57 = vpop.f32.mrb[2].mxu0  ;;  %v537_v59 = vrot.slane %v531_v39, 2  ;;  %v584_v5 = vrot.slane %v578_v56, 2  ;;  %v551_v7 = vrot.slane %v451_v45, 3 }
 0x151   : > { %v512_v58 = vadd.f32 %v506_v49, %v481_v44  ;;  %v508_v60 = vrot.slane %v502_v52, 1  ;;  %v561_v61 = vmul.f32 %v488_v30, %v380_v57  ;;  %v382_v62 = vpop.f32.mrb[3].mxu0  ;;  %v539_v63 = vrot.slane %v533_v54, 2 }
 0x152   : > { %v575_v0 = vadd.f32 %v569_v55, %v560_v46  ;;  %v558_v1 = vmul.f32 %v469_v33, %v380_v57  ;;  %v576_v2 = vmul.f32 %v519_v31, %v380_v57  ;;  %v594_v8 = vrot.slane %v380_v57, 3 }
 0x153   : > { %v543_v3 = vadd.f32 %v537_v59, %v512_v58  ;;  %v514_v4 = vadd.f32 %v508_v60, %v483_v51  ;;  %v567_v6 = vrot.slane %v561_v61, 1  ;;  %v501_v9 = vmul.f32 %v492_v43, %v1663_v41 }
 0x154   : > { %v532_v10 = vmul.f32 %v523_v48, %v1663_v41  ;;  %v582_v14 = vrot.slane %v576_v2, 2  ;;  %v482_v15 = vmul.f32 %v473_v42, %v1663_v41  ;;  %v562_v17 = vmul.f32 %v492_v43, %v382_v62 }
 0x155   : > { %v555_v11 = vadd.f32 %v549_v50, %v543_v3  ;;  %v545_v12 = vadd.f32 %v539_v63, %v514_v4  ;;  %v573_v13 = vadd.f32 %v567_v6, %v558_v1  ;;  %v507_v16 = vrot.slane %v501_v9, 1 }
 0x156   : > { %v577_v18 = vmul.f32 %v523_v48, %v382_v62  ;;  %v559_v21 = vmul.f32 %v473_v42, %v382_v62  ;;  %v590_v22 = vadd.f32 %v584_v5, %v575_v0  ;;  %v538_v24 = vrot.slane %v532_v10, 2 }
 0x157   : > { %v557_v19 = vadd.f32 %v551_v7, %v545_v12  ;;  %v588_v20 = vadd.f32 %v582_v14, %v573_v13  ;;  %v513_v23 = vadd.f32 %v507_v16, %v482_v15  ;;  %v568_v25 = vrot.slane %v562_v17, 1 }
 0x158   : > { %v606_v26 = vrot.slane %v555_v11, 3  ;;  %v602_v29 = vadd.f32 %v596_v53, %v590_v22  ;;  %v550_v30 = vrot.slane %v1663_v41, 3  ;;  %v583_v33 = vrot.slane %v577_v18, 2 }
 0x159   : > { %v608_v27 = vrot.slane %v557_v19, 3  ;;  %v600_v28 = vadd.f32 %v594_v8, %v588_v20  ;;  %v544_v31 = vadd.f32 %v538_v24, %v513_v23  ;;  %v574_v32 = vadd.f32 %v568_v25, %v559_v21 }
 0x15a   : > { %v617_v36 = vrot.slane %v602_v29, 6  ;;  %v595_v39 = vrot.slane %v382_v62, 3  ;;  %v622_v42 = vsel %vm621_vm1, %v555_v11, %v606_v26 }
 0x15b   : > { %v615_v35 = vrot.slane %v600_v28, 6  ;;  %v624_v37 = vsel %vm621_vm1, %v557_v19, %v608_v27  ;;  %v589_v38 = vadd.f32 %v583_v33, %v574_v32  ;;  %v556_v40 = vadd.f32 %v550_v30, %v544_v31 }
 0x15c   : > { %v628_v44 = vsel %vm625_vm2, %v624_v37, %v617_v36 }
 0x15d   : > { %v626_v43 = vsel %vm625_vm2, %v622_v42, %v615_v35  ;;  %v601_v45 = vadd.f32 %v595_v39, %v589_v38  ;;  %v607_v46 = vrot.slane %v556_v40, 3  ;;  %v637_v41 = vadd.f32 %v633_v34, %v628_v44 }
 0x15e   : > { %v635_v49 = vadd.f32 %v633_v34, %v626_v43 }
 0x15f   : > { %v616_v47 = vrot.slane %v601_v45, 6  ;;  %643 = vst [vmem:[#allocation10 + $0x8] sm:$0x7] %v637_v41  ;;  %v623_v48 = vsel %vm621_vm1, %v556_v40, %v607_v46 }
 0x161   : > { %v627_v50 = vsel %vm625_vm2, %v623_v48, %v616_v47 }
 0x162   : > { %v636_v51 = vadd.f32 %v633_v34, %v627_v50 }
 0x164   : > { %v640_v52 = vcombine.low %v635_v49, %v636_v51 }
 0x166   : > { %642 = vst [vmem:[#allocation10] sm:$0x77] %v640_v52 }
 0x167 PF: > { %v663_v53 = vld [vmem:[%s1639_s28 + $0x80] sm:$0xff]  ;;  %v664_v54 = vld [vmem:[%s1639_s28 + $0x88] sm:$0xff]  ;;  %v1432_v58 = vmov 0.0|0.0   ;;  %vm1433_vm3 = vmmov 0   ;;  %v1434_v61 = vmov 0.0   ;;  %v665_v0 = vld [vmem:[%s1639_s28 + $0x90] sm:$0xff] }
 0x168   : > { %v647_v55 = vld [vmem:[%s1639_s28] sm:$0xff]  ;;  %v1102_v56 = vpack.c.bf16 %v664_v54, %v663_v53  ;;  %v648_v57 = vld [vmem:[%s1639_s28 + $0x8] sm:$0xff]  ;;  %1134 = vmatprep.subr.bf16.mxu1 %v1432_v58  ;;  %1083 = vmatprep.mubr.msk.f32.mxu1 %vm1433_vm3, %v1434_v61  ;;  %v666_v1 = vld [vmem:[%s1639_s28 + $0x98] sm:$0xff]  ;;  %p975_p7 = scmp.ne.s32.totalorder %s1491_s25, 2 }
 0x169   : > { %v679_v59 = vld [vmem:[%s1639_s28 + $0x100] sm:$0xff]  ;;  %v680_v60 = vld [vmem:[%s1639_s28 + $0x108] sm:$0xff]  ;;  %v1104_v62 = vpack.c.bf16 %v648_v57, %v647_v55  ;;  %v649_v2 = vld [vmem:[%s1639_s28 + $0x10] sm:$0xff]  ;;  %v1106_v3 = vpack.c.bf16 %v666_v1, %v665_v0  ;;  %vm847_vm4 = vcmask (!%p975_p7), 1042432  }
 0x16a   : > { %v1135_v63 = vpack.c.bf16 %v680_v60, %v679_v59  ;;  %1103 = vmatprep.subr.bf16.mxu0 %v1102_v56  ;;  %v650_v4 = vld [vmem:[%s1639_s28 + $0x18] sm:$0xff]  ;;  %v681_v5 = vld [vmem:[%s1639_s28 + $0x110] sm:$0xff]  ;;  %v667_v9 = vld [vmem:[%s1639_s28 + $0xa0] sm:$0xff] }
 0x16b   : > { %v682_v6 = vld [vmem:[%s1639_s28 + $0x118] sm:$0xff]  ;;  %1105 = vmatpush3.bf16.msra.mxu0 %v1104_v62  ;;  %v1108_v7 = vpack.c.bf16 %v650_v4, %v649_v2  ;;  %v668_v10 = vld [vmem:[%s1639_s28 + $0xa8] sm:$0xff]  ;;  %v651_v11 = vld [vmem:[%s1639_s28 + $0x20] sm:$0xff] }
 0x16c   : > { %1136 = vmatpush3.bf16.msra.mxu1 %v1135_v63  ;;  %v1138_v8 = vpack.c.bf16 %v682_v6, %v681_v5  ;;  %1107 = vmatprep.subr.bf16.mxu0 %v1106_v3  ;;  %v1110_v12 = vpack.c.bf16 %v668_v10, %v667_v9  ;;  %v652_v13 = vld [vmem:[%s1639_s28 + $0x28] sm:$0xff]  ;;  %v683_v14 = vld [vmem:[%s1639_s28 + $0x120] sm:$0xff]  ;;  %v669_v16 = vld [vmem:[%s1639_s28 + $0xb0] sm:$0xff] }
 0x16d   : > { %1137 = vmatprep.subr.bf16.mxu1 %v1432_v58  ;;  %v684_v15 = vld [vmem:[%s1639_s28 + $0x128] sm:$0xff]  ;;  %v670_v17 = vld [vmem:[%s1639_s28 + $0xb8] sm:$0xff]  ;;  %v1112_v18 = vpack.c.bf16 %v652_v13, %v651_v11  ;;  %v653_v20 = vld [vmem:[%s1639_s28 + $0x30] sm:$0xff] }
 0x16e   : > { %v1141_v19 = vpack.c.bf16 %v684_v15, %v683_v14  ;;  %v1114_v21 = vpack.c.bf16 %v670_v17, %v669_v16  ;;  %v654_v22 = vld [vmem:[%s1639_s28 + $0x38] sm:$0xff]  ;;  %v685_v23 = vld [vmem:[%s1639_s28 + $0x130] sm:$0xff]  ;;  %v671_v25 = vld [vmem:[%s1639_s28 + $0xc0] sm:$0xff] }
 0x16f   : > { %1109 = vmatpush3.bf16.msra.mxu0 %v1108_v7  ;;  %v686_v24 = vld [vmem:[%s1639_s28 + $0x138] sm:$0xff]  ;;  %v672_v26 = vld [vmem:[%s1639_s28 + $0xc8] sm:$0xff]  ;;  %v1116_v27 = vpack.c.bf16 %v654_v22, %v653_v20  ;;  %v655_v29 = vld [vmem:[%s1639_s28 + $0x40] sm:$0xff] }
 0x170   : > { %1139 = vmatpush3.bf16.msra.mxu1 %v1138_v8  ;;  %1111 = vmatprep.subr.bf16.mxu0 %v1110_v12  ;;  %v1144_v28 = vpack.c.bf16 %v686_v24, %v685_v23  ;;  %v1118_v30 = vpack.c.bf16 %v672_v26, %v671_v25  ;;  %v656_v31 = vld [vmem:[%s1639_s28 + $0x48] sm:$0xff]  ;;  %v687_v32 = vld [vmem:[%s1639_s28 + $0x140] sm:$0xff]  ;;  %v673_v34 = vld [vmem:[%s1639_s28 + $0xd0] sm:$0xff] }
 0x171   : > { %1140 = vmatprep.subr.bf16.mxu1 %v1432_v58  ;;  %v688_v33 = vld [vmem:[%s1639_s28 + $0x148] sm:$0xff]  ;;  %v674_v35 = vld [vmem:[%s1639_s28 + $0xd8] sm:$0xff]  ;;  %v645_v36 = vld [vmem:[#allocation10] sm:$0x77]  ;;  %v1120_v37 = vpack.c.bf16 %v656_v31, %v655_v29 }
 0x172   : > { %v1147_v38 = vpack.c.bf16 %v688_v33, %v687_v32  ;;  %v657_v39 = vld [vmem:[%s1639_s28 + $0x50] sm:$0xff]  ;;  %v696_v40 = vcombine.high %v645_v36, %v645_v36  ;;  %v1122_v42 = vpack.c.bf16 %v674_v35, %v673_v34  ;;  %v658_v43 = vld [vmem:[%s1639_s28 + $0x58] sm:$0xff]  ;;  %v675_v46 = vld [vmem:[%s1639_s28 + $0xe0] sm:$0xff] }
 0x173   : > { %1113 = vmatpush3.bf16.msra.mxu0 %v1112_v18  ;;  %v689_v44 = vld [vmem:[%s1639_s28 + $0x150] sm:$0xff]  ;;  %v690_v45 = vld [vmem:[%s1639_s28 + $0x158] sm:$0xff]  ;;  %v676_v41 = vld [vmem:[%s1639_s28 + $0xe8] sm:$0xff]  ;;  %v1124_v47 = vpack.c.bf16 %v658_v43, %v657_v39 }
 0x174   : > { %1142 = vmatpush3.bf16.msra.mxu1 %v1141_v19  ;;  %1115 = vmatprep.subr.bf16.mxu0 %v1114_v21  ;;  %v1150_v48 = vpack.c.bf16 %v690_v45, %v689_v44  ;;  %v659_v49 = vld [vmem:[%s1639_s28 + $0x60] sm:$0xff]  ;;  %v1126_v50 = vpack.c.bf16 %v676_v41, %v675_v46  ;;  %v660_v51 = vld [vmem:[%s1639_s28 + $0x68] sm:$0xff]  ;;  %v677_v54 = vld [vmem:[%s1639_s28 + $0xf0] sm:$0xff] }
 0x175   : > { %1143 = vmatprep.subr.bf16.mxu1 %v1432_v58  ;;  %762 = vmatprep.mubr.f32.mxu0 %v696_v40  ;;  %v691_v52 = vld [vmem:[%s1639_s28 + $0x160] sm:$0xff]  ;;  %v692_v53 = vld [vmem:[%s1639_s28 + $0x168] sm:$0xff]  ;;  %v678_v55 = vld [vmem:[%s1639_s28 + $0xf8] sm:$0xff]  ;;  %v1128_v56 = vpack.c.bf16 %v660_v51, %v659_v49 }
 0x176   : > { %v1153_v57 = vpack.c.bf16 %v692_v53, %v691_v52  ;;  %v661_v59 = vld [vmem:[%s1639_s28 + $0x70] sm:$0xff]  ;;  %v1130_v60 = vpack.c.bf16 %v678_v55, %v677_v54  ;;  %v662_v61 = vld [vmem:[%s1639_s28 + $0x78] sm:$0xff]  ;;  %v646_v2 = vld [vmem:[#allocation10 + $0x8] sm:$0x7] }
 0x177   : > { %1117 = vmatpush3.bf16.msra.mxu0 %v1116_v27  ;;  %v693_v62 = vld [vmem:[%s1639_s28 + $0x170] sm:$0xff]  ;;  %v694_v63 = vld [vmem:[%s1639_s28 + $0x178] sm:$0xff]  ;;  %v1132_v0 = vpack.c.bf16 %v662_v61, %v661_v59  ;;  %v838_v9 = vld [vmem:[#allocation2] sm:$0x7] }
 0x178   : > { %1145 = vmatpush3.bf16.msra.mxu1 %v1144_v28  ;;  %1119 = vmatprep.subr.bf16.mxu0 %v1118_v30  ;;  %v1156_v1 = vpack.c.bf16 %v694_v63, %v693_v62 }
 0x179   : > { %1146 = vmatprep.subr.bf16.mxu1 %v1432_v58 }
 0x17b   : > { %1121 = vmatpush3.bf16.msra.mxu0 %v1120_v37 }
 0x17c   : > { %1148 = vmatpush3.bf16.msra.mxu1 %v1147_v38  ;;  %1123 = vmatprep.subr.bf16.mxu0 %v1122_v42 }
 0x17d   : > { %1149 = vmatprep.subr.bf16.mxu1 %v1432_v58 }
 0x17f   : > { %1125 = vmatpush3.bf16.msra.mxu0 %v1124_v47 }
 0x180   : > { %1151 = vmatpush3.bf16.msra.mxu1 %v1150_v48  ;;  %1127 = vmatprep.subr.bf16.mxu0 %v1126_v50 }
 0x181   : > { %1152 = vmatprep.subr.bf16.mxu1 %v1432_v58 }
 0x183   : > { %1129 = vmatpush3.bf16.msra.mxu0 %v1128_v56 }
 0x184   : > { %1154 = vmatpush3.bf16.msra.mxu1 %v1153_v57  ;;  %1131 = vmatprep.subr.bf16.mxu0 %v1130_v60 }
 0x185   : > { %1155 = vmatprep.subr.bf16.mxu1 %v1432_v58 }
 0x187   : > { %1133 = vmatpush3.bf16.msra.mxu0 %v1132_v0 }
 0x188   : > { %1157 = vmatpush3.bf16.msra.mxu1 %v1156_v1 }
 0x18a   : > { %763 = vmatmul.mubr.f32.vlgmr.msra.gmra.mrb[0].mxu0 %v645_v36 }
 0x18b   : > { %1084 = vmatmul.mubr.f32.vlgmr.msra.gmra.mrb[0].mxu1 %v646_v2 }
 0x25d   : > { %v1020_v3 = vpop.f32.mrb[0].mxu0 }
 0x25e   : > { %v834_v4 = vpop.f32.mrb[0].mxu1  ;;  %v1021_v5 = vpop.f32.mrb[1].mxu0 }
 0x25f   : > { %v1085_v6 = vpop.f32.mrb[1].mxu1  ;;  %v1022_v7 = vadd.f32 %v1021_v5, %v1020_v3 }
 0x261   : > { %v835_v8 = vadd.f32 %v1022_v7, %v834_v4  ;;  %845 = sbr.rel (%p975_p7) target bundleno = 829 (0x33d), region = 60 }
 0x263   : > { %v839_v10 = vmul.f32 %v835_v8, %v835_v8 }
 0x265   : > { %v840_v11 = vadd.f32 %v839_v10, %v838_v9 }
 0x267   : > { %841 = vst [vmem:[#allocation2] sm:$0x7] %v840_v11 }
 0x26e   : > { %v846_v12 = vld [vmem:[#allocation2] sm:$0x7] }
 0x26f   : > { %v848_v58 = vsel %vm847_vm4, %v846_v12, 0.0 }
 0x270   : > { %849 = vadd.xlane.f32.xlu0 %v848_v58 }
 0x2fd   : > { %v850_v13 = vpop.xlane.xlu0 %849 }
 0x2fe   : > { %v851_v14 = vrot.slane %v850_v13, 4 }
 0x300   : > { %v852_v15 = vadd.f32 %v851_v14, %v850_v13 }
 0x302   : > { %v853_v16 = vrot.slane %v852_v15, 2 }
 0x304   : > { %v854_v17 = vadd.f32 %v853_v16, %v852_v15 }
 0x306   : > { %v855_v18 = vrot.slane %v854_v17, 1 }
 0x308   : > { %v856_v19 = vadd.f32 %v855_v18, %v854_v17 }
 0x30a   : > { %1160 = vpush %v856_v19 }
 0x33b   : > { %s1161_s17 = spop %1160 }
 0x33c   : > { %859 = sst [smem:[#allocation11]] %s1161_s17 }
 0x33d PF: > { %p1196_p11 = scmp.eq.s32.totalorder %s1491_s25, 2  ;;  %s1435_s14 = smov [#allocation10]  }
 0x33e   : > { %s867_s16 = sshll.u32 %s1435_s14, 4  ;;  %s868_s16 = int_to_ptr.vmem [resolvable:$true] %s867_s16 }
 0x33f   : > { %s1333_s18 = scalar_lea.vmem %s868_s16, 192  ;;  %p1340_p10 = scmp.lt.s32.totalorder %s868_s16, %s868_s16 }
 0x340   : > { %p1334_p13 = scmp.ne.s32.totalorder %s868_s16, %s1333_s18  ;;  %p1341_p0 = scmp.lt.s32.totalorder %s1333_s18, %s1333_s18 }
 0x342   : > { %p1335_p12 = pnand %p1334_p13, %p1196_p11  ;;  %p1342_p5 = por %p1341_p0, %p1340_p10 }
 0x344   : > { %p1336_p8 = pneg %p1335_p12 }
 0x346   : > { %p1343_p9 = pnand %p1342_p5, %p1336_p8 }
 0x348   : > { %1346 = shalt.err (!%p1343_p9)
}
 0x349   : > { %s1347_s12 = scalar_lea.hbm %s1793_s5, 192 }
 0x34a   : > { %p1348_p1 = scmp.ne.s32.totalorder %s1793_s5, %s1347_s12  ;;  %p1353_p2 = scmp.lt.u32.totalorder %s1347_s12, %s1793_s5 }
 0x34c   : > { %p1349_p3 = pnand %p1348_p1, %p1196_p11 }
 0x34e   : > { %p1350_p6 = pneg %p1349_p3 }
 0x350   : > { %p1355_p4 = pnand %p1353_p2, %p1350_p6 }
 0x352   : > { %1358 = shalt.err (!%p1355_p4)
}
 0x353   : > { %1173 = dma.vmem_to_hbm [thread:$0]  (%p1196_p11), %s868_s16, 192, %s1793_s5, [#allocation5]  }
 0x354   : > { %s1359_s24 = scalar_lea.hbm %s1794_s6, 16 }
 0x355   : > { %p1360_p7 = scmp.ne.s32.totalorder %s1794_s6, %s1359_s24  ;;  %p1365_p8 = scmp.lt.u32.totalorder %s1359_s24, %s1794_s6 }
 0x357   : > { %p1361_p13 = pnand %p1360_p7, %p1196_p11 }
 0x359   : > { %p1362_p12 = pneg %p1361_p13 }
 0x35b   : > { %p1367_p10 = pnand %p1365_p8, %p1362_p12 }
 0x35d   : > { %1370 = shalt.err (!%p1367_p10)
}
 0x35e   : > { %s1436_s14 = smov [#allocation11]  }
 0x35f   : > { %1175 = dma.smem_to_hbm (%p1196_p11), %s1436_s14, 16, %s1794_s6, [#allocation6]  }
 0x360   : > { %1400 = dma.done.wait (%p1196_p11), [#allocation5], 192  }
 0x361   : > { %1402 = vsyncadd (%p1196_p11), [#allocation5], 4294967104 }
 0x362   : > { %1404 = dma.done.wait (%p1196_p11), [#allocation6], 16  }
 0x363   : > { %1406 = vsyncadd (%p1196_p11), [#allocation6], 4294967280 }
 0x364   : > { %888 = sfence }
 0x365 PF: > { %p18_p0 = scmp.ge.s32.totalorder %s1494_s26, 5   ;;  %s1814_s21 = smov %s1413_s22 }
 0x366   : > { %s1815_s22 = smov %s1417_s23  ;;  %s1816_s23 = smov %s1504_s29 }
 0x367   : > { %s1817_s24 = smov %s1494_s26  ;;  %20 = sbr.rel (!%p18_p0) target bundleno = 5 (0x5), region = 104 }
 0x36e   :  { %894 = vsyncpa [#allocation4], 1 }
 0x36f   :  { %896 = vsyncpa [#allocation4 + $0x1], 1 }
 0x370   :  { %897 = vsyncpa [#allocation8], 1 }
 0x371   :  { %898 = vsyncpa [#allocation5], 1 }
 0x372   :  { %900 = vsyncpa [#allocation5 + $0x1], 1 }
 0x373   :  { %901 = vsyncpa [#allocation6], 1 }
 0x374   :  { %903 = vsyncpa [#allocation6 + $0x1], 1 }

</bundles_post_ra>
